<compile_context>
chip_gen: v7x
topology: tpu7x:2x2x1
jax: 0.10.0
libtpu: 0.0.40
codegen_flags: <defaults>
</compile_context>

<pallas_src>
import math

import jax
import jax.numpy as jnp
from jax.experimental import pallas as pl
from jax.experimental.pallas import tpu as pltpu

_EPS = 1e-5


def _make_recurrence_kernel(batch: int, seq_len: int, embed_dim: int, eps: float = _EPS):
    """Embedding gather + S-step recurrence, fused. Grid-less (serial latency chain)."""

    def kernel(tok_ref, emb_ref, wd_ref, bd_ref, g2_ref, beta2_ref, z_ref):
        # Loop-invariant params loaded / broadcast ONCE (hoisted out of the chain).
        wd = wd_ref[...]                                            # (E, E) f32
        bd = jnp.broadcast_to(bd_ref[...], (batch, embed_dim))      # (B, E)
        g2 = jnp.broadcast_to(g2_ref[...], (batch, embed_dim))
        beta2 = jnp.broadcast_to(beta2_ref[...], (batch, embed_dim))

        z = jnp.zeros((batch, embed_dim), jnp.float32)

        # Statically unrolled: S is small and fixed, scheduler sees the whole chain.
        for s in range(seq_len):
            # Gather the B embedding rows for step s: SMEM scalar token id drives a
            # dynamic sublane slice of the VMEM table (no one-hot, no full-table scan).
            rows = [emb_ref[pl.ds(tok_ref[s, b], 1), :] for b in range(batch)]
            x_s = jnp.concatenate(rows, axis=0)                     # (B, E)

            z = z + x_s
            z = z + jnp.dot(z, wd, preferred_element_type=jnp.float32) + bd

            # LayerNorm with de-serialized reductions: E[h] and E[h^2] are independent.
            mu = jnp.mean(z, axis=-1, keepdims=True)
            ms = jnp.mean(z * z, axis=-1, keepdims=True)
            var = ms - mu * mu
            z = (z - mu) * jax.lax.rsqrt(var + eps) * g2 + beta2

        z_ref[...] = z

    return kernel


def _vocab_head_kernel(z_ref, wv_ref, bv_ref, y_ref):
    """One lane-dense V_out tile of y = z @ wv + bv (bf16 MXU, f32 accumulate)."""
    z = z_ref[...].astype(jnp.bfloat16)
    y_ref[...] = (jnp.dot(z, wv_ref[...], preferred_element_type=jnp.float32)
                  + bv_ref[...])


def basic_rnn_forward(hidden_state, output_sequence, params):
    """BasicRNN.forward: returns (z, y) with shapes (B, 1, E) and (B, 1, V_out)."""
    del hidden_state  # faithful: `k = hidden_state` is never used in the reference forward

    B, S = output_sequence.shape
    _, E = params["emb_out"].shape
    V_out = params["wv"].shape[1]

    tok_sm = output_sequence.T.astype(jnp.int32)      # (S, B): step s is row s

    vmem = pltpu.MemorySpace.VMEM
    smem = pltpu.MemorySpace.SMEM

    # ---- Kernel 1: embedding gather + serial recurrence -> z (B, E) ------------------
    z2d = pl.pallas_call(
        _make_recurrence_kernel(B, S, E),
        out_shape=jax.ShapeDtypeStruct((B, E), jnp.float32),
        in_specs=[
            pl.BlockSpec(memory_space=smem),          # token ids -> SMEM scalars
            pl.BlockSpec(memory_space=vmem),          # embedding table (whole, no dbl-buffer)
            pl.BlockSpec(memory_space=vmem),          # wd
            pl.BlockSpec(memory_space=vmem),          # bd
            pl.BlockSpec(memory_space=vmem),          # gamma2
            pl.BlockSpec(memory_space=vmem),          # beta2
        ],
        out_specs=pl.BlockSpec(memory_space=vmem),
        compiler_params=pltpu.CompilerParams(vmem_limit_bytes=32 * 1024 * 1024),
    )(tok_sm, params["emb_out"], params["wd"], params["bd"],
      params["g2"], params["beta2"])

    # ---- Kernel 2: vocab head y = z @ wv + bv, tiled lane-dense over V_out ----------
    tn = 128 if (V_out % 128 == 0) else V_out
    # TODO(synk): pad V_out to a multiple of 128 for lane-dense stores at odd sizes.
    y2d = pl.pallas_call(
        _vocab_head_kernel,
        out_shape=jax.ShapeDtypeStruct((B, V_out), jnp.float32),
        grid=(V_out // tn,),
        in_specs=[
            pl.BlockSpec((B, E), lambda j: (0, 0)),   # z (loop-invariant, tiny)
            pl.BlockSpec((E, tn), lambda j: (0, j)),  # wv tile (bf16, pipelined)
            pl.BlockSpec((1, tn), lambda j: (0, j)),  # bv tile
        ],
        out_specs=pl.BlockSpec((B, tn), lambda j: (0, j)),
        compiler_params=pltpu.CompilerParams(
            dimension_semantics=("parallel",),
            vmem_limit_bytes=32 * 1024 * 1024),
    )(z2d, params["wv"], params["bv"])

    return z2d.reshape(B, 1, E), y2d.reshape(B, 1, V_out)


def init_basic_rnn_params(key, embed_dim, output_vocab_size):
    """Deterministic init: nn.Embedding ~ N(0,1); nn.Linear ~ U(-1/sqrt(fan_in), 1/sqrt(fan_in))."""
    ks = jax.random.split(key, 5)

    def lin_w(k, fan_in, fan_out):
        bound = 1.0 / math.sqrt(fan_in)
        return jax.random.uniform(k, (fan_in, fan_out), jnp.float32, -bound, bound)

    def lin_b(k, fan_in, fan_out):
        bound = 1.0 / math.sqrt(fan_in)
        return jax.random.uniform(k, (1, fan_out), jnp.float32, -bound, bound)

    return dict(
        emb_out=jax.random.normal(ks[0], (output_vocab_size, embed_dim), jnp.float32),
        wd=lin_w(ks[1], embed_dim, embed_dim),
        bd=lin_b(ks[2], embed_dim, embed_dim),
        g2=jnp.ones((1, embed_dim), jnp.float32),
        beta2=jnp.zeros((1, embed_dim), jnp.float32),
        # Vocab head runs on the MXU in bf16 (f32 accumulate) — store it bf16.
        wv=lin_w(ks[3], embed_dim, output_vocab_size).astype(jnp.bfloat16),
        bv=lin_b(ks[4], embed_dim, output_vocab_size),
    )


if __name__ == "__main__":
    BATCH, SEQ, EMBED, OUT_VOCAB = 2, 8, 32, 256

    key = jax.random.PRNGKey(0)
    k_tok, k_hid, k_par = jax.random.split(key, 3)
    output_sequence = jax.random.randint(k_tok, (BATCH, SEQ), 0, OUT_VOCAB, jnp.int32)
    hidden_state = jax.random.normal(k_hid, (BATCH, 1, EMBED), jnp.float32)  # unused by forward
    params = init_basic_rnn_params(k_par, EMBED, OUT_VOCAB)

    z, y = basic_rnn_forward(hidden_state, output_sequence, params)
    z, y = jax.block_until_ready((z, y))

    assert z.shape == (BATCH, 1, EMBED)
    assert y.shape == (BATCH, 1, OUT_VOCAB)
    assert jnp.all(jnp.isfinite(z)) and jnp.all(jnp.isfinite(y))
    print("KERNEL_OK")
</pallas_src>

<mosaic_0001>
module attributes {stable_mosaic.version = 11 : i64} {
  func.func @kernel(%arg0: memref<8x2xi32, #tpu.memory_space<smem>>, %arg1: memref<256x32xf32, #tpu.memory_space<vmem>>, %arg2: memref<32x32xf32, #tpu.memory_space<vmem>>, %arg3: memref<1x32xf32, #tpu.memory_space<vmem>>, %arg4: memref<1x32xf32, #tpu.memory_space<vmem>>, %arg5: memref<1x32xf32, #tpu.memory_space<vmem>>, %arg6: memref<2x32xf32, #tpu.memory_space<vmem>>) attributes {dimension_semantics = [], scalar_prefetch = 0 : i64, scratch_operands = 0 : i64, tpu.core_type = #tpu.core_type<tc>} {
    %c0 = arith.constant 0 : index
    %c0_0 = arith.constant 0 : index
    %0 = vector.load %arg2[%c0, %c0_0] : memref<32x32xf32, #tpu.memory_space<vmem>>, vector<32x32xf32>
    %c0_1 = arith.constant 0 : index
    %c0_2 = arith.constant 0 : index
    %1 = vector.load %arg3[%c0_1, %c0_2] : memref<1x32xf32, #tpu.memory_space<vmem>>, vector<1x32xf32>
    %2 = vector.shape_cast %1 : vector<1x32xf32> to vector<1x32xf32>
    %3 = vector.broadcast %2 : vector<1x32xf32> to vector<2x32xf32>
    %c0_3 = arith.constant 0 : index
    %c0_4 = arith.constant 0 : index
    %4 = vector.load %arg4[%c0_3, %c0_4] : memref<1x32xf32, #tpu.memory_space<vmem>>, vector<1x32xf32>
    %5 = vector.shape_cast %4 : vector<1x32xf32> to vector<1x32xf32>
    %6 = vector.broadcast %5 : vector<1x32xf32> to vector<2x32xf32>
    %c0_5 = arith.constant 0 : index
    %c0_6 = arith.constant 0 : index
    %7 = vector.load %arg5[%c0_5, %c0_6] : memref<1x32xf32, #tpu.memory_space<vmem>>, vector<1x32xf32>
    %8 = vector.shape_cast %7 : vector<1x32xf32> to vector<1x32xf32>
    %9 = vector.broadcast %8 : vector<1x32xf32> to vector<2x32xf32>
    %cst = arith.constant 0.000000e+00 : f32
    %10 = vector.broadcast %cst : f32 to vector<2x32xf32>
    %c0_7 = arith.constant 0 : index
    %c0_8 = arith.constant 0 : index
    %11 = memref.load %arg0[%c0_7, %c0_8] : memref<8x2xi32, #tpu.memory_space<smem>>
    %12 = arith.index_cast %11 : i32 to index
    %c0_9 = arith.constant 0 : index
    %13 = vector.load %arg1[%12, %c0_9] : memref<256x32xf32, #tpu.memory_space<vmem>>, vector<1x32xf32>
    %c0_10 = arith.constant 0 : index
    %c1 = arith.constant 1 : index
    %14 = memref.load %arg0[%c0_10, %c1] : memref<8x2xi32, #tpu.memory_space<smem>>
    %15 = arith.index_cast %14 : i32 to index
    %c0_11 = arith.constant 0 : index
    %16 = vector.load %arg1[%15, %c0_11] : memref<256x32xf32, #tpu.memory_space<vmem>>, vector<1x32xf32>
    %17 = tpu.concatenate %13, %16 in 0 : vector<1x32xf32>, vector<1x32xf32> -> vector<2x32xf32>
    %18 = arith.addf %10, %17 : vector<2x32xf32>
    %cst_12 = arith.constant dense<0.000000e+00> : vector<2x32xf32>
    %19 = tpu.matmul %18, %0, %cst_12 {dimension_numbers = #tpu.dot_dimension_numbers<[1], [0], [0], [1], [0, 0, 1, 1], [], []>} : vector<2x32xf32>, vector<32x32xf32>, vector<2x32xf32> -> vector<2x32xf32>
    %20 = arith.addf %18, %19 : vector<2x32xf32>
    %21 = arith.addf %20, %3 : vector<2x32xf32>
    %cst_13 = arith.constant dense<0.000000e+00> : vector<2xf32>
    %22 = vector.multi_reduction <add>, %21, %cst_13 [1] : vector<2x32xf32> to vector<2xf32>
    %23 = vector.shape_cast %22 : vector<2xf32> to vector<2x1xf32>
    %cst_14 = arith.constant 3.200000e+01 : f32
    %24 = vector.broadcast %cst_14 : f32 to vector<2x1xf32>
    %25 = arith.divf %23, %24 : vector<2x1xf32>
    %26 = arith.mulf %21, %21 : vector<2x32xf32>
    %cst_15 = arith.constant dense<0.000000e+00> : vector<2xf32>
    %27 = vector.multi_reduction <add>, %26, %cst_15 [1] : vector<2x32xf32> to vector<2xf32>
    %28 = vector.shape_cast %27 : vector<2xf32> to vector<2x1xf32>
    %cst_16 = arith.constant 3.200000e+01 : f32
    %29 = vector.broadcast %cst_16 : f32 to vector<2x1xf32>
    %30 = arith.divf %28, %29 : vector<2x1xf32>
    %31 = arith.mulf %25, %25 : vector<2x1xf32>
    %32 = arith.subf %30, %31 : vector<2x1xf32>
    %33 = vector.broadcast %25 : vector<2x1xf32> to vector<2x32xf32>
    %34 = arith.subf %21, %33 : vector<2x32xf32>
    %cst_17 = arith.constant 9.99999974E-6 : f32
    %35 = vector.broadcast %cst_17 : f32 to vector<2x1xf32>
    %36 = arith.addf %32, %35 : vector<2x1xf32>
    %37 = math.rsqrt %36 : vector<2x1xf32>
    %38 = vector.broadcast %37 : vector<2x1xf32> to vector<2x32xf32>
    %39 = arith.mulf %34, %38 : vector<2x32xf32>
    %40 = arith.mulf %39, %6 : vector<2x32xf32>
    %41 = arith.addf %40, %9 : vector<2x32xf32>
    %c1_18 = arith.constant 1 : index
    %c0_19 = arith.constant 0 : index
    %42 = memref.load %arg0[%c1_18, %c0_19] : memref<8x2xi32, #tpu.memory_space<smem>>
    %43 = arith.index_cast %42 : i32 to index
    %c0_20 = arith.constant 0 : index
    %44 = vector.load %arg1[%43, %c0_20] : memref<256x32xf32, #tpu.memory_space<vmem>>, vector<1x32xf32>
    %c1_21 = arith.constant 1 : index
    %c1_22 = arith.constant 1 : index
    %45 = memref.load %arg0[%c1_21, %c1_22] : memref<8x2xi32, #tpu.memory_space<smem>>
    %46 = arith.index_cast %45 : i32 to index
    %c0_23 = arith.constant 0 : index
    %47 = vector.load %arg1[%46, %c0_23] : memref<256x32xf32, #tpu.memory_space<vmem>>, vector<1x32xf32>
    %48 = tpu.concatenate %44, %47 in 0 : vector<1x32xf32>, vector<1x32xf32> -> vector<2x32xf32>
    %49 = arith.addf %41, %48 : vector<2x32xf32>
    %cst_24 = arith.constant dense<0.000000e+00> : vector<2x32xf32>
    %50 = tpu.matmul %49, %0, %cst_24 {dimension_numbers = #tpu.dot_dimension_numbers<[1], [0], [0], [1], [0, 0, 1, 1], [], []>} : vector<2x32xf32>, vector<32x32xf32>, vector<2x32xf32> -> vector<2x32xf32>
    %51 = arith.addf %49, %50 : vector<2x32xf32>
    %52 = arith.addf %51, %3 : vector<2x32xf32>
    %cst_25 = arith.constant dense<0.000000e+00> : vector<2xf32>
    %53 = vector.multi_reduction <add>, %52, %cst_25 [1] : vector<2x32xf32> to vector<2xf32>
    %54 = vector.shape_cast %53 : vector<2xf32> to vector<2x1xf32>
    %cst_26 = arith.constant 3.200000e+01 : f32
    %55 = vector.broadcast %cst_26 : f32 to vector<2x1xf32>
    %56 = arith.divf %54, %55 : vector<2x1xf32>
    %57 = arith.mulf %52, %52 : vector<2x32xf32>
    %cst_27 = arith.constant dense<0.000000e+00> : vector<2xf32>
    %58 = vector.multi_reduction <add>, %57, %cst_27 [1] : vector<2x32xf32> to vector<2xf32>
    %59 = vector.shape_cast %58 : vector<2xf32> to vector<2x1xf32>
    %cst_28 = arith.constant 3.200000e+01 : f32
    %60 = vector.broadcast %cst_28 : f32 to vector<2x1xf32>
    %61 = arith.divf %59, %60 : vector<2x1xf32>
    %62 = arith.mulf %56, %56 : vector<2x1xf32>
    %63 = arith.subf %61, %62 : vector<2x1xf32>
    %64 = vector.broadcast %56 : vector<2x1xf32> to vector<2x32xf32>
    %65 = arith.subf %52, %64 : vector<2x32xf32>
    %cst_29 = arith.constant 9.99999974E-6 : f32
    %66 = vector.broadcast %cst_29 : f32 to vector<2x1xf32>
    %67 = arith.addf %63, %66 : vector<2x1xf32>
    %68 = math.rsqrt %67 : vector<2x1xf32>
    %69 = vector.broadcast %68 : vector<2x1xf32> to vector<2x32xf32>
    %70 = arith.mulf %65, %69 : vector<2x32xf32>
    %71 = arith.mulf %70, %6 : vector<2x32xf32>
    %72 = arith.addf %71, %9 : vector<2x32xf32>
    %c2 = arith.constant 2 : index
    %c0_30 = arith.constant 0 : index
    %73 = memref.load %arg0[%c2, %c0_30] : memref<8x2xi32, #tpu.memory_space<smem>>
    %74 = arith.index_cast %73 : i32 to index
    %c0_31 = arith.constant 0 : index
    %75 = vector.load %arg1[%74, %c0_31] : memref<256x32xf32, #tpu.memory_space<vmem>>, vector<1x32xf32>
    %c2_32 = arith.constant 2 : index
    %c1_33 = arith.constant 1 : index
    %76 = memref.load %arg0[%c2_32, %c1_33] : memref<8x2xi32, #tpu.memory_space<smem>>
    %77 = arith.index_cast %76 : i32 to index
    %c0_34 = arith.constant 0 : index
    %78 = vector.load %arg1[%77, %c0_34] : memref<256x32xf32, #tpu.memory_space<vmem>>, vector<1x32xf32>
    %79 = tpu.concatenate %75, %78 in 0 : vector<1x32xf32>, vector<1x32xf32> -> vector<2x32xf32>
    %80 = arith.addf %72, %79 : vector<2x32xf32>
    %cst_35 = arith.constant dense<0.000000e+00> : vector<2x32xf32>
    %81 = tpu.matmul %80, %0, %cst_35 {dimension_numbers = #tpu.dot_dimension_numbers<[1], [0], [0], [1], [0, 0, 1, 1], [], []>} : vector<2x32xf32>, vector<32x32xf32>, vector<2x32xf32> -> vector<2x32xf32>
    %82 = arith.addf %80, %81 : vector<2x32xf32>
    %83 = arith.addf %82, %3 : vector<2x32xf32>
    %cst_36 = arith.constant dense<0.000000e+00> : vector<2xf32>
    %84 = vector.multi_reduction <add>, %83, %cst_36 [1] : vector<2x32xf32> to vector<2xf32>
    %85 = vector.shape_cast %84 : vector<2xf32> to vector<2x1xf32>
    %cst_37 = arith.constant 3.200000e+01 : f32
    %86 = vector.broadcast %cst_37 : f32 to vector<2x1xf32>
    %87 = arith.divf %85, %86 : vector<2x1xf32>
    %88 = arith.mulf %83, %83 : vector<2x32xf32>
    %cst_38 = arith.constant dense<0.000000e+00> : vector<2xf32>
    %89 = vector.multi_reduction <add>, %88, %cst_38 [1] : vector<2x32xf32> to vector<2xf32>
    %90 = vector.shape_cast %89 : vector<2xf32> to vector<2x1xf32>
    %cst_39 = arith.constant 3.200000e+01 : f32
    %91 = vector.broadcast %cst_39 : f32 to vector<2x1xf32>
    %92 = arith.divf %90, %91 : vector<2x1xf32>
    %93 = arith.mulf %87, %87 : vector<2x1xf32>
    %94 = arith.subf %92, %93 : vector<2x1xf32>
    %95 = vector.broadcast %87 : vector<2x1xf32> to vector<2x32xf32>
    %96 = arith.subf %83, %95 : vector<2x32xf32>
    %cst_40 = arith.constant 9.99999974E-6 : f32
    %97 = vector.broadcast %cst_40 : f32 to vector<2x1xf32>
    %98 = arith.addf %94, %97 : vector<2x1xf32>
    %99 = math.rsqrt %98 : vector<2x1xf32>
    %100 = vector.broadcast %99 : vector<2x1xf32> to vector<2x32xf32>
    %101 = arith.mulf %96, %100 : vector<2x32xf32>
    %102 = arith.mulf %101, %6 : vector<2x32xf32>
    %103 = arith.addf %102, %9 : vector<2x32xf32>
    %c3 = arith.constant 3 : index
    %c0_41 = arith.constant 0 : index
    %104 = memref.load %arg0[%c3, %c0_41] : memref<8x2xi32, #tpu.memory_space<smem>>
    %105 = arith.index_cast %104 : i32 to index
    %c0_42 = arith.constant 0 : index
    %106 = vector.load %arg1[%105, %c0_42] : memref<256x32xf32, #tpu.memory_space<vmem>>, vector<1x32xf32>
    %c3_43 = arith.constant 3 : index
    %c1_44 = arith.constant 1 : index
    %107 = memref.load %arg0[%c3_43, %c1_44] : memref<8x2xi32, #tpu.memory_space<smem>>
    %108 = arith.index_cast %107 : i32 to index
    %c0_45 = arith.constant 0 : index
    %109 = vector.load %arg1[%108, %c0_45] : memref<256x32xf32, #tpu.memory_space<vmem>>, vector<1x32xf32>
    %110 = tpu.concatenate %106, %109 in 0 : vector<1x32xf32>, vector<1x32xf32> -> vector<2x32xf32>
    %111 = arith.addf %103, %110 : vector<2x32xf32>
    %cst_46 = arith.constant dense<0.000000e+00> : vector<2x32xf32>
    %112 = tpu.matmul %111, %0, %cst_46 {dimension_numbers = #tpu.dot_dimension_numbers<[1], [0], [0], [1], [0, 0, 1, 1], [], []>} : vector<2x32xf32>, vector<32x32xf32>, vector<2x32xf32> -> vector<2x32xf32>
    %113 = arith.addf %111, %112 : vector<2x32xf32>
    %114 = arith.addf %113, %3 : vector<2x32xf32>
    %cst_47 = arith.constant dense<0.000000e+00> : vector<2xf32>
    %115 = vector.multi_reduction <add>, %114, %cst_47 [1] : vector<2x32xf32> to vector<2xf32>
    %116 = vector.shape_cast %115 : vector<2xf32> to vector<2x1xf32>
    %cst_48 = arith.constant 3.200000e+01 : f32
    %117 = vector.broadcast %cst_48 : f32 to vector<2x1xf32>
    %118 = arith.divf %116, %117 : vector<2x1xf32>
    %119 = arith.mulf %114, %114 : vector<2x32xf32>
    %cst_49 = arith.constant dense<0.000000e+00> : vector<2xf32>
    %120 = vector.multi_reduction <add>, %119, %cst_49 [1] : vector<2x32xf32> to vector<2xf32>
    %121 = vector.shape_cast %120 : vector<2xf32> to vector<2x1xf32>
    %cst_50 = arith.constant 3.200000e+01 : f32
    %122 = vector.broadcast %cst_50 : f32 to vector<2x1xf32>
    %123 = arith.divf %121, %122 : vector<2x1xf32>
    %124 = arith.mulf %118, %118 : vector<2x1xf32>
    %125 = arith.subf %123, %124 : vector<2x1xf32>
    %126 = vector.broadcast %118 : vector<2x1xf32> to vector<2x32xf32>
    %127 = arith.subf %114, %126 : vector<2x32xf32>
    %cst_51 = arith.constant 9.99999974E-6 : f32
    %128 = vector.broadcast %cst_51 : f32 to vector<2x1xf32>
    %129 = arith.addf %125, %128 : vector<2x1xf32>
    %130 = math.rsqrt %129 : vector<2x1xf32>
    %131 = vector.broadcast %130 : vector<2x1xf32> to vector<2x32xf32>
    %132 = arith.mulf %127, %131 : vector<2x32xf32>
    %133 = arith.mulf %132, %6 : vector<2x32xf32>
    %134 = arith.addf %133, %9 : vector<2x32xf32>
    %c4 = arith.constant 4 : index
    %c0_52 = arith.constant 0 : index
    %135 = memref.load %arg0[%c4, %c0_52] : memref<8x2xi32, #tpu.memory_space<smem>>
    %136 = arith.index_cast %135 : i32 to index
    %c0_53 = arith.constant 0 : index
    %137 = vector.load %arg1[%136, %c0_53] : memref<256x32xf32, #tpu.memory_space<vmem>>, vector<1x32xf32>
    %c4_54 = arith.constant 4 : index
    %c1_55 = arith.constant 1 : index
    %138 = memref.load %arg0[%c4_54, %c1_55] : memref<8x2xi32, #tpu.memory_space<smem>>
    %139 = arith.index_cast %138 : i32 to index
    %c0_56 = arith.constant 0 : index
    %140 = vector.load %arg1[%139, %c0_56] : memref<256x32xf32, #tpu.memory_space<vmem>>, vector<1x32xf32>
    %141 = tpu.concatenate %137, %140 in 0 : vector<1x32xf32>, vector<1x32xf32> -> vector<2x32xf32>
    %142 = arith.addf %134, %141 : vector<2x32xf32>
    %cst_57 = arith.constant dense<0.000000e+00> : vector<2x32xf32>
    %143 = tpu.matmul %142, %0, %cst_57 {dimension_numbers = #tpu.dot_dimension_numbers<[1], [0], [0], [1], [0, 0, 1, 1], [], []>} : vector<2x32xf32>, vector<32x32xf32>, vector<2x32xf32> -> vector<2x32xf32>
    %144 = arith.addf %142, %143 : vector<2x32xf32>
    %145 = arith.addf %144, %3 : vector<2x32xf32>
    %cst_58 = arith.constant dense<0.000000e+00> : vector<2xf32>
    %146 = vector.multi_reduction <add>, %145, %cst_58 [1] : vector<2x32xf32> to vector<2xf32>
    %147 = vector.shape_cast %146 : vector<2xf32> to vector<2x1xf32>
    %cst_59 = arith.constant 3.200000e+01 : f32
    %148 = vector.broadcast %cst_59 : f32 to vector<2x1xf32>
    %149 = arith.divf %147, %148 : vector<2x1xf32>
    %150 = arith.mulf %145, %145 : vector<2x32xf32>
    %cst_60 = arith.constant dense<0.000000e+00> : vector<2xf32>
    %151 = vector.multi_reduction <add>, %150, %cst_60 [1] : vector<2x32xf32> to vector<2xf32>
    %152 = vector.shape_cast %151 : vector<2xf32> to vector<2x1xf32>
    %cst_61 = arith.constant 3.200000e+01 : f32
    %153 = vector.broadcast %cst_61 : f32 to vector<2x1xf32>
    %154 = arith.divf %152, %153 : vector<2x1xf32>
    %155 = arith.mulf %149, %149 : vector<2x1xf32>
    %156 = arith.subf %154, %155 : vector<2x1xf32>
    %157 = vector.broadcast %149 : vector<2x1xf32> to vector<2x32xf32>
    %158 = arith.subf %145, %157 : vector<2x32xf32>
    %cst_62 = arith.constant 9.99999974E-6 : f32
    %159 = vector.broadcast %cst_62 : f32 to vector<2x1xf32>
    %160 = arith.addf %156, %159 : vector<2x1xf32>
    %161 = math.rsqrt %160 : vector<2x1xf32>
    %162 = vector.broadcast %161 : vector<2x1xf32> to vector<2x32xf32>
    %163 = arith.mulf %158, %162 : vector<2x32xf32>
    %164 = arith.mulf %163, %6 : vector<2x32xf32>
    %165 = arith.addf %164, %9 : vector<2x32xf32>
    %c5 = arith.constant 5 : index
    %c0_63 = arith.constant 0 : index
    %166 = memref.load %arg0[%c5, %c0_63] : memref<8x2xi32, #tpu.memory_space<smem>>
    %167 = arith.index_cast %166 : i32 to index
    %c0_64 = arith.constant 0 : index
    %168 = vector.load %arg1[%167, %c0_64] : memref<256x32xf32, #tpu.memory_space<vmem>>, vector<1x32xf32>
    %c5_65 = arith.constant 5 : index
    %c1_66 = arith.constant 1 : index
    %169 = memref.load %arg0[%c5_65, %c1_66] : memref<8x2xi32, #tpu.memory_space<smem>>
    %170 = arith.index_cast %169 : i32 to index
    %c0_67 = arith.constant 0 : index
    %171 = vector.load %arg1[%170, %c0_67] : memref<256x32xf32, #tpu.memory_space<vmem>>, vector<1x32xf32>
    %172 = tpu.concatenate %168, %171 in 0 : vector<1x32xf32>, vector<1x32xf32> -> vector<2x32xf32>
    %173 = arith.addf %165, %172 : vector<2x32xf32>
    %cst_68 = arith.constant dense<0.000000e+00> : vector<2x32xf32>
    %174 = tpu.matmul %173, %0, %cst_68 {dimension_numbers = #tpu.dot_dimension_numbers<[1], [0], [0], [1], [0, 0, 1, 1], [], []>} : vector<2x32xf32>, vector<32x32xf32>, vector<2x32xf32> -> vector<2x32xf32>
    %175 = arith.addf %173, %174 : vector<2x32xf32>
    %176 = arith.addf %175, %3 : vector<2x32xf32>
    %cst_69 = arith.constant dense<0.000000e+00> : vector<2xf32>
    %177 = vector.multi_reduction <add>, %176, %cst_69 [1] : vector<2x32xf32> to vector<2xf32>
    %178 = vector.shape_cast %177 : vector<2xf32> to vector<2x1xf32>
    %cst_70 = arith.constant 3.200000e+01 : f32
    %179 = vector.broadcast %cst_70 : f32 to vector<2x1xf32>
    %180 = arith.divf %178, %179 : vector<2x1xf32>
    %181 = arith.mulf %176, %176 : vector<2x32xf32>
    %cst_71 = arith.constant dense<0.000000e+00> : vector<2xf32>
    %182 = vector.multi_reduction <add>, %181, %cst_71 [1] : vector<2x32xf32> to vector<2xf32>
    %183 = vector.shape_cast %182 : vector<2xf32> to vector<2x1xf32>
    %cst_72 = arith.constant 3.200000e+01 : f32
    %184 = vector.broadcast %cst_72 : f32 to vector<2x1xf32>
    %185 = arith.divf %183, %184 : vector<2x1xf32>
    %186 = arith.mulf %180, %180 : vector<2x1xf32>
    %187 = arith.subf %185, %186 : vector<2x1xf32>
    %188 = vector.broadcast %180 : vector<2x1xf32> to vector<2x32xf32>
    %189 = arith.subf %176, %188 : vector<2x32xf32>
    %cst_73 = arith.constant 9.99999974E-6 : f32
    %190 = vector.broadcast %cst_73 : f32 to vector<2x1xf32>
    %191 = arith.addf %187, %190 : vector<2x1xf32>
    %192 = math.rsqrt %191 : vector<2x1xf32>
    %193 = vector.broadcast %192 : vector<2x1xf32> to vector<2x32xf32>
    %194 = arith.mulf %189, %193 : vector<2x32xf32>
    %195 = arith.mulf %194, %6 : vector<2x32xf32>
    %196 = arith.addf %195, %9 : vector<2x32xf32>
    %c6 = arith.constant 6 : index
    %c0_74 = arith.constant 0 : index
    %197 = memref.load %arg0[%c6, %c0_74] : memref<8x2xi32, #tpu.memory_space<smem>>
    %198 = arith.index_cast %197 : i32 to index
    %c0_75 = arith.constant 0 : index
    %199 = vector.load %arg1[%198, %c0_75] : memref<256x32xf32, #tpu.memory_space<vmem>>, vector<1x32xf32>
    %c6_76 = arith.constant 6 : index
    %c1_77 = arith.constant 1 : index
    %200 = memref.load %arg0[%c6_76, %c1_77] : memref<8x2xi32, #tpu.memory_space<smem>>
    %201 = arith.index_cast %200 : i32 to index
    %c0_78 = arith.constant 0 : index
    %202 = vector.load %arg1[%201, %c0_78] : memref<256x32xf32, #tpu.memory_space<vmem>>, vector<1x32xf32>
    %203 = tpu.concatenate %199, %202 in 0 : vector<1x32xf32>, vector<1x32xf32> -> vector<2x32xf32>
    %204 = arith.addf %196, %203 : vector<2x32xf32>
    %cst_79 = arith.constant dense<0.000000e+00> : vector<2x32xf32>
    %205 = tpu.matmul %204, %0, %cst_79 {dimension_numbers = #tpu.dot_dimension_numbers<[1], [0], [0], [1], [0, 0, 1, 1], [], []>} : vector<2x32xf32>, vector<32x32xf32>, vector<2x32xf32> -> vector<2x32xf32>
    %206 = arith.addf %204, %205 : vector<2x32xf32>
    %207 = arith.addf %206, %3 : vector<2x32xf32>
    %cst_80 = arith.constant dense<0.000000e+00> : vector<2xf32>
    %208 = vector.multi_reduction <add>, %207, %cst_80 [1] : vector<2x32xf32> to vector<2xf32>
    %209 = vector.shape_cast %208 : vector<2xf32> to vector<2x1xf32>
    %cst_81 = arith.constant 3.200000e+01 : f32
    %210 = vector.broadcast %cst_81 : f32 to vector<2x1xf32>
    %211 = arith.divf %209, %210 : vector<2x1xf32>
    %212 = arith.mulf %207, %207 : vector<2x32xf32>
    %cst_82 = arith.constant dense<0.000000e+00> : vector<2xf32>
    %213 = vector.multi_reduction <add>, %212, %cst_82 [1] : vector<2x32xf32> to vector<2xf32>
    %214 = vector.shape_cast %213 : vector<2xf32> to vector<2x1xf32>
    %cst_83 = arith.constant 3.200000e+01 : f32
    %215 = vector.broadcast %cst_83 : f32 to vector<2x1xf32>
    %216 = arith.divf %214, %215 : vector<2x1xf32>
    %217 = arith.mulf %211, %211 : vector<2x1xf32>
    %218 = arith.subf %216, %217 : vector<2x1xf32>
    %219 = vector.broadcast %211 : vector<2x1xf32> to vector<2x32xf32>
    %220 = arith.subf %207, %219 : vector<2x32xf32>
    %cst_84 = arith.constant 9.99999974E-6 : f32
    %221 = vector.broadcast %cst_84 : f32 to vector<2x1xf32>
    %222 = arith.addf %218, %221 : vector<2x1xf32>
    %223 = math.rsqrt %222 : vector<2x1xf32>
    %224 = vector.broadcast %223 : vector<2x1xf32> to vector<2x32xf32>
    %225 = arith.mulf %220, %224 : vector<2x32xf32>
    %226 = arith.mulf %225, %6 : vector<2x32xf32>
    %227 = arith.addf %226, %9 : vector<2x32xf32>
    %c7 = arith.constant 7 : index
    %c0_85 = arith.constant 0 : index
    %228 = memref.load %arg0[%c7, %c0_85] : memref<8x2xi32, #tpu.memory_space<smem>>
    %229 = arith.index_cast %228 : i32 to index
    %c0_86 = arith.constant 0 : index
    %230 = vector.load %arg1[%229, %c0_86] : memref<256x32xf32, #tpu.memory_space<vmem>>, vector<1x32xf32>
    %c7_87 = arith.constant 7 : index
    %c1_88 = arith.constant 1 : index
    %231 = memref.load %arg0[%c7_87, %c1_88] : memref<8x2xi32, #tpu.memory_space<smem>>
    %232 = arith.index_cast %231 : i32 to index
    %c0_89 = arith.constant 0 : index
    %233 = vector.load %arg1[%232, %c0_89] : memref<256x32xf32, #tpu.memory_space<vmem>>, vector<1x32xf32>
    %234 = tpu.concatenate %230, %233 in 0 : vector<1x32xf32>, vector<1x32xf32> -> vector<2x32xf32>
    %235 = arith.addf %227, %234 : vector<2x32xf32>
    %cst_90 = arith.constant dense<0.000000e+00> : vector<2x32xf32>
    %236 = tpu.matmul %235, %0, %cst_90 {dimension_numbers = #tpu.dot_dimension_numbers<[1], [0], [0], [1], [0, 0, 1, 1], [], []>} : vector<2x32xf32>, vector<32x32xf32>, vector<2x32xf32> -> vector<2x32xf32>
    %237 = arith.addf %235, %236 : vector<2x32xf32>
    %238 = arith.addf %237, %3 : vector<2x32xf32>
    %cst_91 = arith.constant dense<0.000000e+00> : vector<2xf32>
    %239 = vector.multi_reduction <add>, %238, %cst_91 [1] : vector<2x32xf32> to vector<2xf32>
    %240 = vector.shape_cast %239 : vector<2xf32> to vector<2x1xf32>
    %cst_92 = arith.constant 3.200000e+01 : f32
    %241 = vector.broadcast %cst_92 : f32 to vector<2x1xf32>
    %242 = arith.divf %240, %241 : vector<2x1xf32>
    %243 = arith.mulf %238, %238 : vector<2x32xf32>
    %cst_93 = arith.constant dense<0.000000e+00> : vector<2xf32>
    %244 = vector.multi_reduction <add>, %243, %cst_93 [1] : vector<2x32xf32> to vector<2xf32>
    %245 = vector.shape_cast %244 : vector<2xf32> to vector<2x1xf32>
    %cst_94 = arith.constant 3.200000e+01 : f32
    %246 = vector.broadcast %cst_94 : f32 to vector<2x1xf32>
    %247 = arith.divf %245, %246 : vector<2x1xf32>
    %248 = arith.mulf %242, %242 : vector<2x1xf32>
    %249 = arith.subf %247, %248 : vector<2x1xf32>
    %250 = vector.broadcast %242 : vector<2x1xf32> to vector<2x32xf32>
    %251 = arith.subf %238, %250 : vector<2x32xf32>
    %cst_95 = arith.constant 9.99999974E-6 : f32
    %252 = vector.broadcast %cst_95 : f32 to vector<2x1xf32>
    %253 = arith.addf %249, %252 : vector<2x1xf32>
    %254 = math.rsqrt %253 : vector<2x1xf32>
    %255 = vector.broadcast %254 : vector<2x1xf32> to vector<2x32xf32>
    %256 = arith.mulf %251, %255 : vector<2x32xf32>
    %257 = arith.mulf %256, %6 : vector<2x32xf32>
    %258 = arith.addf %257, %9 : vector<2x32xf32>
    %c0_96 = arith.constant 0 : index
    %c0_97 = arith.constant 0 : index
    %259 = vector.load %arg6[%c0_96, %c0_97] : memref<2x32xf32, #tpu.memory_space<vmem>>, vector<2x32xf32>
    tpu.vector_store %arg6[%c0_96, %c0_97], %258 {strides = array<i32>} : memref<2x32xf32, #tpu.memory_space<vmem>>, vector<2x32xf32>,
    return
  }
}

</mosaic_0001>

<bundles_post_ra>
// kernel: tpu_custom_call.1
= control target key start
LH: loop header
LB: loop body
LE: loop exit
PB: predicated region body
PF: predicated region fallthrough
CT: control target
= control target key end

     0   :  { %11 = vsyncpa [#allocation4], 0  ;;  %s1422_s0 = inlined_call_operand.vmem [shape: s32[8,2], index: 0, kind: input, shape index: {}]   ;;  %s1423_s1 = inlined_call_operand.vmem [shape: f32[256,32], index: 1, kind: input, shape index: {}]   ;;  %s1424_s2 = inlined_call_operand.vmem [shape: f32[32,32], index: 2, kind: input, shape index: {}]   ;;  %s1425_s3 = inlined_call_operand.vmem [shape: f32[1,32], index: 3, kind: input, shape index: {}]   ;;  %s1426_s4 = inlined_call_operand.vmem [shape: f32[1,32], index: 4, kind: input, shape index: {}]   ;;  %s1427_s5 = inlined_call_operand.vmem [shape: f32[1,32], index: 5, kind: input, shape index: {}]   ;;  %s1428_s6 = inlined_call_operand.hbm [shape: f32[2,32], index: 6, kind: output, shape index: {}]  }
   0x1   :  { %12 = vsyncpa [#allocation3], 0  ;;  %s19_s23 = sshll.u32 %s1422_s0, 4  ;;  %s20_s23 = int_to_ptr.vmem [resolvable:$true] %s19_s23 }
   0x2   :  { %s1145_s24 = scalar_lea.vmem %s20_s23, 128  ;;  %p1150_p1 = scmp.lt.s32.totalorder %s20_s23, %s20_s23 }
   0x3   :  { %p1146_p0 = scmp.ne.s32.totalorder %s20_s23, %s1145_s24  ;;  %p1151_p2 = scmp.lt.s32.totalorder %s1145_s24, %s1145_s24 }
   0x5   :  { %p1152_p3 = por %p1151_p2, %p1150_p1 }
   0x7   :  { %p1153_p4 = pnand %p1152_p3, %p1146_p0 }
   0x9   :  { %1156 = shalt.err (!%p1153_p4)
}
   0xa   :  { %s1183_s25 = smov [#allocation2]  }
   0xb   :  { %22 = dma.vmem_to_smem %s20_s23, 128, %s1183_s25, [#allocation4]  }
   0xc   :  { %1179 = dma.done.wait [#allocation4], 128  }
   0xd   :  { %1180 = vsyncadd [#allocation4], 4294967168 }
   0xe   :  { %36 = sfence }
   0xf   :  { %v37_v0 = vld [vmem:[%s1424_s2] sm:$0xff]  ;;  %v38_v1 = vld [vmem:[%s1424_s2 + $0x8] sm:$0xff]  ;;  %v39_v2 = vld [vmem:[%s1424_s2 + $0x10] sm:$0xff]  ;;  %v1184_v3 = vmov 0.0|0.0   ;;  %vm1185_vm0 = vmmov 0   ;;  %v1186_v6 = vmov 0.0  }
  0x10   :  { %1076 = vmatprep.subr.bf16.mxu0 %v1184_v3  ;;  %v1236_v4 = vpack.c.bf16 %v38_v1, %v37_v0  ;;  %v40_v5 = vld [vmem:[%s1424_s2 + $0x18] sm:$0xff]  ;;  %996 = vmatprep.mubr.msk.f32.mxu0 %vm1185_vm0, %v1186_v6  ;;  %s62_s9 = sld [smem:[#allocation2]]  ;;  %s925_s10 = sld [smem:[#allocation2 + $0x1]]  ;;  %vm71_vm1 = vcmask 1040384   ;;  %vm74_vm2 = vcmask 261120   ;;  %vm150_vm3 = vcmask 254976  }
  0x11   :  { %1082 = vmatprep.subr.bf16.mxu1 %v1184_v3  ;;  %1007 = vmatprep.mubr.msk.f32.mxu1 %vm1185_vm0, %v1186_v6  ;;  %v1247_v7 = vpack.c.bf16 %v40_v5, %v39_v2  ;;  %v1273_v12 = vld [vmem:[%s1425_s3] ss:$0 sm:$0xff]  ;;  %s928_s3 = sld [smem:[#allocation2 + $0x81]]  ;;  %s927_s18 = sld [smem:[#allocation2 + $0x80]] }
  0x12   :  { %1078 = vmatpush3.bf16.msra.mxu0 %v1236_v4  ;;  %1084 = vmatpush3.bf16.msra.mxu1 %v1236_v4  ;;  %v1287_v30 = vld [vmem:[%s1426_s4] ss:$0 sm:$0xff]  ;;  %s931_s4 = sld [smem:[#allocation2 + $0x101]]  ;;  %s933_s2 = sld [smem:[#allocation2 + $0x180]] }
  0x13   :  { %1079 = vmatprep.subr.bf16.mxu0 %v1184_v3  ;;  %1085 = vmatprep.subr.bf16.mxu1 %v1184_v3  ;;  %v1292_v34 = vld [vmem:[%s1427_s5] ss:$0 sm:$0xff]  ;;  %s930_s5 = sld [smem:[#allocation2 + $0x100]]  ;;  %s937_s17 = sld [smem:[#allocation2 + $0x201]] }
  0x14   :  { %s939_s25 = sld [smem:[#allocation2 + $0x280]]  ;;  %s943_s0 = sld [smem:[#allocation2 + $0x301]] }
  0x16   :  { %1081 = vmatpush3.bf16.msra.mxu0 %v1247_v7  ;;  %s63_s12 = scalar_lea.vmem %s1423_s1, %s62_s9  ;;  %s66_s15 = scalar_lea.vmem %s1423_s1, %s925_s10  ;;  %1087 = vmatpush3.bf16.msra.mxu1 %v1247_v7 }
  0x17   :  { %v64_v8 = vld [vmem:[%s63_s12] sm:$0x1]  ;;  %1088 = vmatprep.subr.bf16.mxu0 %v1184_v3  ;;  %1094 = vmatprep.subr.bf16.mxu1 %v1184_v3  ;;  %s173_s21 = scalar_lea.vmem %s1423_s1, %s928_s3  ;;  %s170_s24 = scalar_lea.vmem %s1423_s1, %s927_s18 }
  0x18   :  { %v67_v9 = vld [vmem:[%s66_s15] sm:$0x1]  ;;  %s276_s30 = scalar_lea.vmem %s1423_s1, %s931_s4  ;;  %s934_s10 = sld [smem:[#allocation2 + $0x181]] }
  0x19   :  { %v69_v10 = vrot.slane %v67_v9, 7  ;;  %v174_v27 = vld [vmem:[%s173_s21] sm:$0x1]  ;;  %s273_s9 = scalar_lea.vmem %s1423_s1, %s930_s5  ;;  %s376_s16 = scalar_lea.vmem %s1423_s1, %s933_s2 }
  0x1a   :  { %v176_v31 = vrot.slane %v174_v27, 7  ;;  %v171_v33 = vld [vmem:[%s170_s24] sm:$0x1]  ;;  %s936_s3 = sld [smem:[#allocation2 + $0x200]]  ;;  %s482_s20 = scalar_lea.vmem %s1423_s1, %s937_s17 }
  0x1b   :  { %v72_v11 = vsel %vm71_vm1, %v64_v8, %v69_v10  ;;  %v277_v53 = vld [vmem:[%s276_s30] sm:$0x1]  ;;  %s940_s24 = sld [smem:[#allocation2 + $0x281]]  ;;  %s582_s29 = scalar_lea.vmem %s1423_s1, %s939_s25 }
  0x1c   :  { %997 = vmatmul.mubr.msk.f32.vlgmr.msra.gmra.mrb[0].mxu0 %vm74_vm2, %v72_v11  ;;  %v178_v36 = vsel %vm71_vm1, %v171_v33, %v176_v31  ;;  %v279_v56 = vrot.slane %v277_v53, 7  ;;  %v274_v58 = vld [vmem:[%s273_s9] sm:$0x1]  ;;  %s942_s30 = sld [smem:[#allocation2 + $0x300]]  ;;  %s688_s9 = scalar_lea.vmem %s1423_s1, %s943_s0 }
  0x1d   :  { %1090 = vmatpush3.bf16.msra.mxu0 %v1236_v4  ;;  %1018 = vmatprep.mubr.msk.f32.mxu0 %vm1185_vm0, %v1186_v6  ;;  %s946_s12 = sld [smem:[#allocation2 + $0x381]] }
  0x1e   :  { %1091 = vmatprep.subr.bf16.mxu0 %v1184_v3  ;;  %v281_v60 = vsel %vm71_vm1, %v274_v58, %v279_v56  ;;  %s379_s13 = scalar_lea.vmem %s1423_s1, %s934_s10 }
  0x20   :  { %s479_s23 = scalar_lea.vmem %s1423_s1, %s936_s3 }
  0x21   :  { %1093 = vmatpush3.bf16.msra.mxu0 %v1247_v7  ;;  %s585_s28 = scalar_lea.vmem %s1423_s1, %s940_s24 }
  0x22   :  { %1100 = vmatprep.subr.bf16.mxu0 %v1184_v3  ;;  %s685_s11 = scalar_lea.vmem %s1423_s1, %s942_s30 }
  0xef   :  { %v144_v13 = vpop.f32.mrb[0].mxu0 }
  0xf0   :  { %v148_v14 = vadd.f32 %v144_v13, %v72_v11  ;;  %v998_v15 = vpop.f32.mrb[1].mxu0 }
  0xf2   :  { %v149_v16 = vadd.f32 %v1273_v12, %v148_v14 }
  0xf4   :  { %v151_v17 = vsel %vm150_vm3, %v149_v16, 0.0  ;;  %v156_v18 = vmul.f32 %v149_v16, %v149_v16 }
  0xf5   :  { %152 = vadd.xlane.f32.xlu0 %v151_v17 }
  0xf6   :  { %v157_v19 = vsel %vm150_vm3, %v156_v18, 0.0  ;;  %v380_v18 = vld [vmem:[%s379_s13] sm:$0x1]  ;;  %s945_s13 = sld [smem:[#allocation2 + $0x380]] }
  0xf9   :  { %158 = vadd.xlane.f32.xlu0 %v157_v19 }
  0xfc   :  { %s788_s18 = scalar_lea.vmem %s1423_s1, %s945_s13 }
 0x182   :  { %v153_v20 = vpop.xlane.xlu0 %152 }
 0x183   :  { %v155_v21 = vmul.f32 0.03125, %v153_v20 }
 0x185   :  { %v161_v23 = vmul.f32 %v155_v21, %v155_v21  ;;  %v163_v28 = vsub.f32 %v149_v16, %v155_v21  ;;  %v382_v21 = vrot.slane %v380_v18, 7 }
 0x186   :  { %v159_v22 = vpop.xlane.xlu0 %158 }
 0x187   :  { %v160_v24 = vmul.f32 0.03125, %v159_v22 }
 0x189   :  { %v162_v25 = vsub.f32 %v160_v24, %v161_v23  ;;  %v377_v23 = vld [vmem:[%s376_s16] sm:$0x1]  ;;  %s791_s16 = scalar_lea.vmem %s1423_s1, %s946_s12  ;;  %s1187_s1 = smov [#allocation5]  }
 0x18a   :  { %s897_s19 = sshll.u32 %s1187_s1, 4  ;;  %s898_s19 = int_to_ptr.vmem [resolvable:$true] %s897_s19 }
 0x18b   :  { %v164_v26 = vadd.f32 1e-05, %v162_v25  ;;  %v384_v25 = vsel %vm71_vm1, %v377_v23, %v382_v21  ;;  %p1162_p6 = scmp.lt.s32.totalorder %s898_s19, %s898_s19 }
 0x18d   :  { %1129 = vrsqrt.f32 %v164_v26 }
 0x197   :  { %v1130_v29 = vpop.eup %1129 }
 0x198   :  { %v166_v32 = vmul.f32 %v1130_v29, %v163_v28 }
 0x19a   :  { %v167_v35 = vmul.f32 %v1287_v30, %v166_v32 }
 0x19c   :  { %v168_v37 = vadd.f32 %v1292_v34, %v167_v35 }
 0x19e   :  { %v179_v38 = vadd.f32 %v178_v36, %v168_v37 }
 0x1a0   :  { %1008 = vmatmul.mubr.msk.f32.vlgmr.msra.gmra.mrb[0].mxu1 %vm74_vm2, %v179_v38 }
 0x1a1   :  { %1096 = vmatpush3.bf16.msra.mxu1 %v1236_v4  ;;  %1029 = vmatprep.mubr.msk.f32.mxu1 %vm1185_vm0, %v1186_v6 }
 0x1a2   :  { %1097 = vmatprep.subr.bf16.mxu1 %v1184_v3 }
 0x1a5   :  { %1099 = vmatpush3.bf16.msra.mxu1 %v1247_v7 }
 0x1a6   :  { %1106 = vmatprep.subr.bf16.mxu1 %v1184_v3 }
 0x273   :  { %v249_v39 = vpop.f32.mrb[0].mxu1 }
 0x274   :  { %v253_v40 = vadd.f32 %v249_v39, %v179_v38  ;;  %v1009_v41 = vpop.f32.mrb[1].mxu1 }
 0x276   :  { %v254_v42 = vadd.f32 %v1273_v12, %v253_v40 }
 0x278   :  { %v255_v43 = vsel %vm150_vm3, %v254_v42, 0.0  ;;  %v259_v44 = vmul.f32 %v254_v42, %v254_v42 }
 0x279   :  { %256 = vadd.xlane.f32.xlu1 %v255_v43 }
 0x27a   :  { %v260_v45 = vsel %vm150_vm3, %v259_v44, 0.0  ;;  %v483_v44 = vld [vmem:[%s482_s20] sm:$0x1]  ;;  %s1157_s20 = scalar_lea.vmem %s898_s19, 32 }
 0x27b   :  { %p1158_p5 = scmp.ne.s32.totalorder %s898_s19, %s1157_s20  ;;  %p1163_p7 = scmp.lt.s32.totalorder %s1157_s20, %s1157_s20 }
 0x27d   :  { %261 = vadd.xlane.f32.xlu1 %v260_v45  ;;  %p1164_p8 = por %p1163_p7, %p1162_p6 }
 0x27f   :  { %p1165_p9 = pnand %p1164_p8, %p1158_p5 }
 0x306   :  { %v257_v46 = vpop.xlane.xlu1 %256 }
 0x307   :  { %v258_v47 = vmul.f32 0.03125, %v257_v46 }
 0x309   :  { %v264_v49 = vmul.f32 %v258_v47, %v258_v47  ;;  %v266_v54 = vsub.f32 %v254_v42, %v258_v47  ;;  %v485_v47 = vrot.slane %v483_v44, 7 }
 0x30a   :  { %v262_v48 = vpop.xlane.xlu1 %261 }
 0x30b   :  { %v263_v50 = vmul.f32 0.03125, %v262_v48 }
 0x30d   :  { %v265_v51 = vsub.f32 %v263_v50, %v264_v49  ;;  %v480_v49 = vld [vmem:[%s479_s23] sm:$0x1] }
 0x30f   :  { %v267_v52 = vadd.f32 1e-05, %v265_v51  ;;  %v487_v51 = vsel %vm71_vm1, %v480_v49, %v485_v47 }
 0x311   :  { %1131 = vrsqrt.f32 %v267_v52 }
 0x31b   :  { %v1132_v55 = vpop.eup %1131 }
 0x31c   :  { %v269_v57 = vmul.f32 %v1132_v55, %v266_v54 }
 0x31e   :  { %v270_v59 = vmul.f32 %v1287_v30, %v269_v57 }
 0x320   :  { %v271_v61 = vadd.f32 %v1292_v34, %v270_v59 }
 0x322   :  { %v282_v62 = vadd.f32 %v281_v60, %v271_v61 }
 0x324   :  { %1019 = vmatmul.mubr.msk.f32.vlgmr.msra.gmra.mrb[2].mxu0 %vm74_vm2, %v282_v62 }
 0x325   :  { %1102 = vmatpush3.bf16.msra.mxu0 %v1236_v4  ;;  %1040 = vmatprep.mubr.msk.f32.mxu0 %vm1185_vm0, %v1186_v6 }
 0x326   :  { %1103 = vmatprep.subr.bf16.mxu0 %v1184_v3 }
 0x329   :  { %1105 = vmatpush3.bf16.msra.mxu0 %v1247_v7 }
 0x32a   :  { %1112 = vmatprep.subr.bf16.mxu0 %v1184_v3 }
 0x3f7   :  { %v352_v63 = vpop.f32.mrb[2].mxu0 }
 0x3f8   :  { %v356_v0 = vadd.f32 %v352_v63, %v282_v62  ;;  %v1020_v1 = vpop.f32.mrb[3].mxu0 }
 0x3fa   :  { %v357_v2 = vadd.f32 %v1273_v12, %v356_v0 }
 0x3fc   :  { %v358_v5 = vsel %vm150_vm3, %v357_v2, 0.0  ;;  %v362_v8 = vmul.f32 %v357_v2, %v357_v2 }
 0x3fd   :  { %359 = vadd.xlane.f32.xlu0 %v358_v5 }
 0x3fe   :  { %v363_v9 = vsel %vm150_vm3, %v362_v8, 0.0  ;;  %v586_v8 = vld [vmem:[%s585_s28] sm:$0x1] }
 0x3ff   :  { %364 = vadd.xlane.f32.xlu1 %v363_v9 }
 0x48a   :  { %v360_v10 = vpop.xlane.xlu0 %359 }
 0x48b   :  { %v361_v11 = vmul.f32 0.03125, %v360_v10 }
 0x48c   :  { %v365_v13 = vpop.xlane.xlu1 %364 }
 0x48d   :  { %v367_v14 = vmul.f32 %v361_v11, %v361_v11  ;;  %v366_v15 = vmul.f32 0.03125, %v365_v13  ;;  %v369_v19 = vsub.f32 %v357_v2, %v361_v11  ;;  %v588_v11 = vrot.slane %v586_v8, 7 }
 0x48f   :  { %v368_v16 = vsub.f32 %v366_v15, %v367_v14  ;;  %v583_v14 = vld [vmem:[%s582_s29] sm:$0x1] }
 0x491   :  { %v370_v17 = vadd.f32 1e-05, %v368_v16  ;;  %v590_v16 = vsel %vm71_vm1, %v583_v14, %v588_v11 }
 0x493   :  { %1133 = vrsqrt.f32 %v370_v17 }
 0x49d   :  { %v1134_v20 = vpop.eup %1133 }
 0x49e   :  { %v372_v22 = vmul.f32 %v1134_v20, %v369_v19 }
 0x4a0   :  { %v373_v24 = vmul.f32 %v1287_v30, %v372_v22 }
 0x4a2   :  { %v374_v26 = vadd.f32 %v1292_v34, %v373_v24 }
 0x4a4   :  { %v385_v27 = vadd.f32 %v384_v25, %v374_v26 }
 0x4a6   :  { %1030 = vmatmul.mubr.msk.f32.vlgmr.msra.gmra.mrb[2].mxu1 %vm74_vm2, %v385_v27 }
 0x4a7   :  { %1108 = vmatpush3.bf16.msra.mxu1 %v1236_v4  ;;  %1051 = vmatprep.mubr.msk.f32.mxu1 %vm1185_vm0, %v1186_v6 }
 0x4a8   :  { %1109 = vmatprep.subr.bf16.mxu1 %v1184_v3 }
 0x4ab   :  { %1111 = vmatpush3.bf16.msra.mxu1 %v1247_v7 }
 0x4ac   :  { %1118 = vmatprep.subr.bf16.mxu1 %v1184_v3 }
 0x579   :  { %v455_v28 = vpop.f32.mrb[2].mxu1 }
 0x57a   :  { %v459_v29 = vadd.f32 %v455_v28, %v385_v27  ;;  %v1031_v31 = vpop.f32.mrb[3].mxu1 }
 0x57c   :  { %v460_v32 = vadd.f32 %v1273_v12, %v459_v29  ;;  %v689_v29 = vld [vmem:[%s688_s9] sm:$0x1] }
 0x57e   :  { %v461_v33 = vsel %vm150_vm3, %v460_v32, 0.0  ;;  %v465_v35 = vmul.f32 %v460_v32, %v460_v32 }
 0x57f   :  { %462 = vadd.xlane.f32.xlu0 %v461_v33  ;;  %v691_v33 = vrot.slane %v689_v29, 7 }
 0x580   :  { %v466_v36 = vsel %vm150_vm3, %v465_v35, 0.0 }
 0x581   :  { %467 = vadd.xlane.f32.xlu1 %v466_v36  ;;  %v686_v36 = vld [vmem:[%s685_s11] sm:$0x1] }
 0x60c   :  { %v463_v37 = vpop.xlane.xlu0 %462 }
 0x60d   :  { %v464_v38 = vmul.f32 0.03125, %v463_v37 }
 0x60e   :  { %v468_v39 = vpop.xlane.xlu1 %467 }
 0x60f   :  { %v470_v40 = vmul.f32 %v464_v38, %v464_v38  ;;  %v469_v41 = vmul.f32 0.03125, %v468_v39  ;;  %v472_v45 = vsub.f32 %v460_v32, %v464_v38  ;;  %v693_v38 = vsel %vm71_vm1, %v686_v36, %v691_v33 }
 0x611   :  { %v471_v42 = vsub.f32 %v469_v41, %v470_v40 }
 0x613   :  { %v473_v43 = vadd.f32 1e-05, %v471_v42 }
 0x615   :  { %1135 = vrsqrt.f32 %v473_v43 }
 0x61f   :  { %v1136_v46 = vpop.eup %1135 }
 0x620   :  { %v475_v48 = vmul.f32 %v1136_v46, %v472_v45 }
 0x622   :  { %v476_v50 = vmul.f32 %v1287_v30, %v475_v48 }
 0x624   :  { %v477_v52 = vadd.f32 %v1292_v34, %v476_v50 }
 0x626   :  { %v488_v53 = vadd.f32 %v487_v51, %v477_v52 }
 0x628   :  { %1041 = vmatmul.mubr.msk.f32.vlgmr.msra.gmra.mrb[4].mxu0 %vm74_vm2, %v488_v53 }
 0x629   :  { %1114 = vmatpush3.bf16.msra.mxu0 %v1236_v4  ;;  %1062 = vmatprep.mubr.msk.f32.mxu0 %vm1185_vm0, %v1186_v6 }
 0x62a   :  { %1115 = vmatprep.subr.bf16.mxu0 %v1184_v3 }
 0x62d   :  { %1117 = vmatpush3.bf16.msra.mxu0 %v1247_v7 }
 0x6fb   :  { %v558_v54 = vpop.f32.mrb[4].mxu0 }
 0x6fc   :  { %v562_v55 = vadd.f32 %v558_v54, %v488_v53  ;;  %v1042_v56 = vpop.f32.mrb[5].mxu0 }
 0x6fe   :  { %v563_v57 = vadd.f32 %v1273_v12, %v562_v55  ;;  %v792_v55 = vld [vmem:[%s791_s16] sm:$0x1] }
 0x700   :  { %v564_v58 = vsel %vm150_vm3, %v563_v57, 0.0  ;;  %v568_v59 = vmul.f32 %v563_v57, %v563_v57 }
 0x701   :  { %565 = vadd.xlane.f32.xlu0 %v564_v58  ;;  %v794_v58 = vrot.slane %v792_v55, 7 }
 0x702   :  { %v569_v60 = vsel %vm150_vm3, %v568_v59, 0.0 }
 0x703   :  { %570 = vadd.xlane.f32.xlu1 %v569_v60  ;;  %v789_v60 = vld [vmem:[%s788_s18] sm:$0x1] }
 0x78e   :  { %v566_v61 = vpop.xlane.xlu0 %565 }
 0x78f   :  { %v567_v62 = vmul.f32 0.03125, %v566_v61 }
 0x790   :  { %v571_v63 = vpop.xlane.xlu1 %570 }
 0x791   :  { %v573_v0 = vmul.f32 %v567_v62, %v567_v62  ;;  %v572_v1 = vmul.f32 0.03125, %v571_v63  ;;  %v575_v9 = vsub.f32 %v563_v57, %v567_v62  ;;  %v796_v62 = vsel %vm71_vm1, %v789_v60, %v794_v58 }
 0x793   :  { %v574_v2 = vsub.f32 %v572_v1, %v573_v0 }
 0x795   :  { %v576_v5 = vadd.f32 1e-05, %v574_v2 }
 0x797   :  { %1137 = vrsqrt.f32 %v576_v5 }
 0x7a1   :  { %v1138_v10 = vpop.eup %1137 }
 0x7a2   :  { %v578_v13 = vmul.f32 %v1138_v10, %v575_v9 }
 0x7a4   :  { %v579_v15 = vmul.f32 %v1287_v30, %v578_v13 }
 0x7a6   :  { %v580_v17 = vadd.f32 %v1292_v34, %v579_v15 }
 0x7a8   :  { %v591_v18 = vadd.f32 %v590_v16, %v580_v17 }
 0x7aa   :  { %1052 = vmatmul.mubr.msk.f32.vlgmr.msra.gmra.mrb[4].mxu1 %vm74_vm2, %v591_v18 }
 0x7ab   :  { %1120 = vmatpush3.bf16.msra.mxu1 %v1236_v4  ;;  %1073 = vmatprep.mubr.msk.f32.mxu1 %vm1185_vm0, %v1186_v6 }
 0x7ac   :  { %1121 = vmatprep.subr.bf16.mxu1 %v1184_v3 }
 0x7af   :  { %1123 = vmatpush3.bf16.msra.mxu1 %v1247_v7 }
 0x87d   :  { %v661_v19 = vpop.f32.mrb[4].mxu1 }
 0x87e   :  { %v665_v20 = vadd.f32 %v661_v19, %v591_v18  ;;  %v1053_v21 = vpop.f32.mrb[5].mxu1 }
 0x880   :  { %v666_v22 = vadd.f32 %v1273_v12, %v665_v20 }
 0x882   :  { %v667_v23 = vsel %vm150_vm3, %v666_v22, 0.0  ;;  %v671_v24 = vmul.f32 %v666_v22, %v666_v22 }
 0x883   :  { %668 = vadd.xlane.f32.xlu0 %v667_v23 }
 0x884   :  { %v672_v25 = vsel %vm150_vm3, %v671_v24, 0.0 }
 0x885   :  { %673 = vadd.xlane.f32.xlu1 %v672_v25 }
 0x910   :  { %v669_v4 = vpop.xlane.xlu0 %668 }
 0x911   :  { %v670_v26 = vmul.f32 0.03125, %v669_v4 }
 0x912   :  { %v674_v27 = vpop.xlane.xlu1 %673 }
 0x913   :  { %v676_v6 = vmul.f32 %v670_v26, %v670_v26  ;;  %v675_v28 = vmul.f32 0.03125, %v674_v27  ;;  %v678_v31 = vsub.f32 %v666_v22, %v670_v26 }
 0x915   :  { %v677_v3 = vsub.f32 %v675_v28, %v676_v6 }
 0x917   :  { %v679_v7 = vadd.f32 1e-05, %v677_v3 }
 0x919   :  { %1139 = vrsqrt.f32 %v679_v7 }
 0x923   :  { %v1140_v32 = vpop.eup %1139 }
 0x924   :  { %v681_v35 = vmul.f32 %v1140_v32, %v678_v31 }
 0x926   :  { %v682_v37 = vmul.f32 %v1287_v30, %v681_v35 }
 0x928   :  { %v683_v39 = vadd.f32 %v1292_v34, %v682_v37 }
 0x92a   :  { %v694_v40 = vadd.f32 %v693_v38, %v683_v39 }
 0x92c   :  { %1063 = vmatmul.mubr.msk.f32.vlgmr.msra.gmra.mrb[6].mxu0 %vm74_vm2, %v694_v40 }
 0x9ff   :  { %v764_v41 = vpop.f32.mrb[6].mxu0 }
 0xa00   :  { %v768_v42 = vadd.f32 %v764_v41, %v694_v40  ;;  %v1064_v43 = vpop.f32.mrb[7].mxu0 }
 0xa02   :  { %v769_v44 = vadd.f32 %v1273_v12, %v768_v42 }
 0xa04   :  { %v770_v45 = vsel %vm150_vm3, %v769_v44, 0.0  ;;  %v774_v46 = vmul.f32 %v769_v44, %v769_v44 }
 0xa05   :  { %771 = vadd.xlane.f32.xlu0 %v770_v45 }
 0xa06   :  { %v775_v47 = vsel %vm150_vm3, %v774_v46, 0.0 }
 0xa07   :  { %776 = vadd.xlane.f32.xlu1 %v775_v47 }
 0xa92   :  { %v772_v48 = vpop.xlane.xlu0 %771 }
 0xa93   :  { %v773_v49 = vmul.f32 0.03125, %v772_v48 }
 0xa94   :  { %v777_v50 = vpop.xlane.xlu1 %776 }
 0xa95   :  { %v779_v51 = vmul.f32 %v773_v49, %v773_v49  ;;  %v778_v52 = vmul.f32 0.03125, %v777_v50  ;;  %v781_v56 = vsub.f32 %v769_v44, %v773_v49 }
 0xa97   :  { %v780_v53 = vsub.f32 %v778_v52, %v779_v51 }
 0xa99   :  { %v782_v54 = vadd.f32 1e-05, %v780_v53 }
 0xa9b   :  { %1141 = vrsqrt.f32 %v782_v54 }
 0xaa5   :  { %v1142_v57 = vpop.eup %1141 }
 0xaa6   :  { %v784_v59 = vmul.f32 %v1142_v57, %v781_v56 }
 0xaa8   :  { %v785_v61 = vmul.f32 %v1287_v30, %v784_v59 }
 0xaaa   :  { %v786_v63 = vadd.f32 %v1292_v34, %v785_v61 }
 0xaac   :  { %v797_v0 = vadd.f32 %v796_v62, %v786_v63 }
 0xaae   :  { %1074 = vmatmul.mubr.msk.f32.vlgmr.msra.gmra.mrb[6].mxu1 %vm74_vm2, %v797_v0 }
 0xb81   :  { %v867_v1 = vpop.f32.mrb[6].mxu1 }
 0xb82   :  { %v871_v2 = vadd.f32 %v867_v1, %v797_v0  ;;  %v1075_v5 = vpop.f32.mrb[7].mxu1 }
 0xb84   :  { %v872_v8 = vadd.f32 %v1273_v12, %v871_v2 }
 0xb86   :  { %v873_v9 = vsel %vm150_vm3, %v872_v8, 0.0  ;;  %v877_v10 = vmul.f32 %v872_v8, %v872_v8 }
 0xb87   :  { %874 = vadd.xlane.f32.xlu0 %v873_v9 }
 0xb88   :  { %v878_v11 = vsel %vm150_vm3, %v877_v10, 0.0 }
 0xb89   :  { %879 = vadd.xlane.f32.xlu1 %v878_v11 }
 0xc14   :  { %v875_v13 = vpop.xlane.xlu0 %874 }
 0xc15   :  { %v876_v14 = vmul.f32 0.03125, %v875_v13 }
 0xc16   :  { %v880_v15 = vpop.xlane.xlu1 %879 }
 0xc17   :  { %v882_v16 = vmul.f32 %v876_v14, %v876_v14  ;;  %v881_v17 = vmul.f32 0.03125, %v880_v15  ;;  %v884_v20 = vsub.f32 %v872_v8, %v876_v14 }
 0xc19   :  { %v883_v18 = vsub.f32 %v881_v17, %v882_v16 }
 0xc1b   :  { %v885_v19 = vadd.f32 1e-05, %v883_v18 }
 0xc1d   :  { %1143 = vrsqrt.f32 %v885_v19 }
 0xc27   :  { %v1144_v21 = vpop.eup %1143 }
 0xc28   :  { %v887_v22 = vmul.f32 %v1144_v21, %v884_v20 }
 0xc2a   :  { %v888_v12 = vmul.f32 %v1287_v30, %v887_v22 }
 0xc2c   :  { %v889_v23 = vadd.f32 %v1292_v34, %v888_v12 }
 0xc2e   :  { %890 = vst.msk [vmem:[#allocation5] sm:$0x3] %vm150_vm3, %v889_v23 }
 0xc2f   :  { %1168 = shalt.err (!%p1165_p9)
}
 0xc30   :  { %s1169_s23 = scalar_lea.hbm %s1428_s6, 32 }
 0xc31   :  { %p1170_p10 = scmp.ne.s32.totalorder %s1428_s6, %s1169_s23  ;;  %p1173_p11 = scmp.lt.u32.totalorder %s1169_s23, %s1428_s6 }
 0xc33   :  { %p1175_p12 = pnand %p1173_p11, %p1170_p10 }
 0xc35   :  { %1178 = shalt.err (!%p1175_p12)
}
 0xc36   :  { %900 = dma.vmem_to_hbm [thread:$0]  %s898_s19, 32, %s1428_s6, [#allocation3]  }
 0xc37   :  { %1181 = dma.done.wait [#allocation3], 32  }
 0xc38   :  { %1182 = vsyncadd [#allocation3], 4294967264 }
 0xc39   :  { %904 = vsyncpa [#allocation3], 1 }
 0xc3a   :  { %905 = vsyncpa [#allocation4], 1 }

</bundles_post_ra>
